<compile_context>
chip_gen: v7x
topology: tpu7x:2x2x1
jax: 0.10.0
libtpu: 0.0.40
codegen_flags: <defaults>
</compile_context>

<pallas_src>
import functools

import jax
import jax.numpy as jnp
from jax.experimental import pallas as pl
from jax.experimental.pallas import tpu as pltpu

NIL_ENTITY = 0               # Constants.NIL_ENTITY
ENTITY_START_TOKEN_ID = 3    # model_args.entity_start_token_id

_NEG_FILL = float(jnp.finfo(jnp.float32).min)   # masked_fill value, same as torch


def _round_up(x, m):
    return ((x + m - 1) // m) * m


def _vmem_budgets():
    """Generation-aware (e_w stream budget, vmem_limit_bytes)."""
    try:
        cap = int(getattr(pltpu.get_tpu_info(), "vmem_capacity_bytes", 128 << 20))
    except Exception:  # no TPU info available at trace time -> assume 128 MiB
        cap = 128 << 20
    if cap <= (64 << 20):            # v7x: 64 MiB per TensorCore
        return 24 << 20, 48 << 20
    return 64 << 20, 96 << 20        # v5e / v6e: 128 MiB physical VMEM


def _choose_tile_v(vocab, d_e, stream_budget):
    """Vocab tile: double-buffered bf16 (TV, d_e) tiles + (M,TV) intermediates in budget."""
    per_col = 2 * d_e * 2 + 1536     # e_w double-buffer (bf16) + f32 intermediate reserve
    tv = (stream_budget // per_col) // 256 * 256
    tv = max(256, min(int(tv), 16384))
    tv = min(tv, _round_up(vocab, 256))   # never tile beyond the (padded) vocab
    return tv


def prepare_entity_memory(params, num_splits=2):
    """One-time weight preparation (call ONCE, outside the training step).

    Pads, transposes (entity-major) and casts e_w to bf16 so that the per-call kernel is
    the only consumer of e_w bytes.  Returns a dict usable by entity_memory_forward.
    """
    e_w = params["e_w"]                      # (d_entity_embed, entity_vocab_size) f32 master
    d_e, vocab = e_w.shape
    stream_budget, vmem_limit = _vmem_budgets()
    tv = _choose_tile_v(vocab, d_e, stream_budget)
    num_splits = max(1, int(num_splits))
    v_pad = _round_up(vocab, tv * num_splits)

    e_w_vmajor = jnp.zeros((v_pad, d_e), jnp.bfloat16)
    e_w_vmajor = e_w_vmajor.at[:vocab, :].set(e_w.T.astype(jnp.bfloat16))

    return {
        "w_in": params["w_in"], "b_in": params["b_in"],
        "w_out": params["w_out"], "b_out": params["b_out"],
        "e_w_vmajor": e_w_vmajor,
        # static tiling metadata (Python ints; do not trace over these)
        "tv": tv, "v_pad": v_pad, "vocab": vocab,
        "num_splits": num_splits, "vmem_limit": vmem_limit,
    }


def _entity_memory_kernel(vocab, tv, tiles_per_split, has_mask, needs_pad_mask, *refs):
    if has_mask:
        (mention_ref, gold_ref, w_in_ref, b_in_ref, e_w_ref, bias_ref,
         m_ref, l_ref, sg_ref, acc_ref, query_sc) = refs
    else:
        (mention_ref, gold_ref, w_in_ref, b_in_ref, e_w_ref,
         m_ref, l_ref, sg_ref, acc_ref, query_sc) = refs
        bias_ref = None

    c = pl.program_id(0)              # vocab split (megacore-parallel on v7x)
    k = pl.program_id(1)              # vocab tile within the split (reduction axis)
    gk = c * tiles_per_split + k      # global vocab-tile index

    # ---- once per split: InputLayer + accumulator init -------------------------
    @pl.when(k == 0)
    def _():
        mention = mention_ref[...].astype(jnp.float32)                 # (M, d_model)
        q = jnp.dot(mention, w_in_ref[...],
                    preferred_element_type=jnp.float32) + b_in_ref[...]
        query_sc[...] = q.astype(jnp.bfloat16)      # bf16 query cached for every tile
        m_ref[...] = jnp.full_like(m_ref, -jnp.inf)
        l_ref[...] = jnp.zeros_like(l_ref)
        sg_ref[...] = jnp.zeros_like(sg_ref)
        acc_ref[...] = jnp.zeros_like(acc_ref)

    # ---- per vocab tile: fused scores + online softmax + pick accumulation -----
    e_tile = e_w_ref[...]                                              # (TV, d_e) bf16
    # scores: contract the shared d_e axis (both last dims) -> (M, TV); no transpose
    s = jax.lax.dot_general(query_sc[...], e_tile, (((1,), (1,)), ((), ())),
                            preferred_element_type=jnp.float32)
    col = jax.lax.broadcasted_iota(jnp.int32, s.shape, 1)              # tile-local columns

    if has_mask:
        s = s + bias_ref[...]              # additive 0 / NEG_FILL bias (covers padded tail)
    elif needs_pad_mask:
        s = jnp.where(col >= vocab - gk * tv, _NEG_FILL, s)            # padded tail only

    # gold logit via tile-local one-hot (contributes only on the tile containing gold)
    sg_ref[...] += jnp.sum(jnp.where(col == gold_ref[...] - gk * tv, s, 0.0),
                           axis=-1, keepdims=True)

    m_prev = m_ref[...]
    m_new = jnp.maximum(m_prev, jnp.max(s, axis=-1, keepdims=True))
    alpha = jnp.exp(m_prev - m_new)
    p = jnp.exp(s - m_new)                                             # unnormalized
    l_ref[...] = alpha * l_ref[...] + jnp.sum(p, axis=-1, keepdims=True)
    acc_ref[...] = alpha * acc_ref[...] + jnp.dot(p.astype(jnp.bfloat16), e_tile,
                                                  preferred_element_type=jnp.float32)
    m_ref[...] = m_new


def entity_memory_forward(input_ids, hidden_state, entity_link, prepared, entity_mask=None):
    """Training-mode forward with last_entity_only=True (one mention per row)."""
    batch, seq = input_ids.shape
    d_model = hidden_state.shape[-1]
    w_in, b_in = prepared["w_in"], prepared["b_in"]
    w_out, b_out = prepared["w_out"], prepared["b_out"]
    e_w = prepared["e_w_vmajor"]                       # (V_pad, d_e) bf16, entity-major
    tv, v_pad, vocab = prepared["tv"], prepared["v_pad"], prepared["vocab"]
    num_splits, vmem_limit = prepared["num_splits"], prepared["vmem_limit"]
    d_e = e_w.shape[1]
    tiles_per_split = v_pad // (tv * num_splits)

    num_mentions = batch   # start_position = [(i, seq-1) for i in range(batch)]
    mention = hidden_state[:, seq - 1, :]                               # (M, d_model)
    gold_vec = entity_link[:, seq - 1].astype(jnp.int32)                # (M,)

    # pad mention dim to a multiple of 8 (f32 sublane)
    m_pad = _round_up(max(num_mentions, 8), 8)
    if m_pad != num_mentions:
        mention = jnp.pad(mention, ((0, m_pad - num_mentions), (0, 0)))
        gold_pad = jnp.pad(gold_vec, (0, m_pad - num_mentions), constant_values=NIL_ENTITY)
    else:
        gold_pad = gold_vec
    gold_col = gold_pad[:, None]                                        # (M_pad, 1)

    has_mask = entity_mask is not None
    needs_pad_mask = (v_pad != vocab)

    def resident(shape):
        n = len(shape)
        return pl.BlockSpec(shape, lambda c, k, _n=n: (0,) * _n)

    in_specs = [
        resident(mention.shape),                          # mention (M_pad, d_model)
        resident(gold_col.shape),                         # gold (M_pad, 1)
        resident(w_in.shape),                             # (d_model, d_e)
        resident(b_in.shape),                             # (1, d_e)
        pl.BlockSpec((tv, d_e),                           # streamed entity-major e_w tile
                     lambda c, k, _t=tiles_per_split: (c * _t + k, 0)),
    ]
    inputs = [mention, gold_col, w_in, b_in, e_w]
    if has_mask:
        bias = jnp.where(entity_mask.astype(bool), _NEG_FILL, 0.0).astype(jnp.float32)
        bias_p = jnp.full((1, v_pad), _NEG_FILL, jnp.float32).at[0, :vocab].set(bias)
        in_specs.append(pl.BlockSpec((1, tv),
                                     lambda c, k, _t=tiles_per_split: (0, c * _t + k)))
        inputs.append(bias_p)

    out_shape = [
        jax.ShapeDtypeStruct((num_splits, m_pad, 1), jnp.float32),      # running max m
        jax.ShapeDtypeStruct((num_splits, m_pad, 1), jnp.float32),      # running denom l
        jax.ShapeDtypeStruct((num_splits, m_pad, 1), jnp.float32),      # gold logit
        jax.ShapeDtypeStruct((num_splits, m_pad, d_e), jnp.float32),    # unnormalized pick
    ]
    out_specs = [
        pl.BlockSpec((None, m_pad, 1), lambda c, k: (c, 0, 0)),
        pl.BlockSpec((None, m_pad, 1), lambda c, k: (c, 0, 0)),
        pl.BlockSpec((None, m_pad, 1), lambda c, k: (c, 0, 0)),
        pl.BlockSpec((None, m_pad, d_e), lambda c, k: (c, 0, 0)),
    ]

    kernel = functools.partial(_entity_memory_kernel, vocab, tv, tiles_per_split,
                               has_mask, needs_pad_mask)

    m_p, l_p, sg_p, acc_p = pl.pallas_call(
        kernel,
        grid_spec=pltpu.PrefetchScalarGridSpec(
            num_scalar_prefetch=0,
            grid=(num_splits, tiles_per_split),
            in_specs=in_specs,
            out_specs=out_specs,
            scratch_shapes=[pltpu.VMEM((m_pad, d_e), jnp.bfloat16)],    # cached bf16 query
        ),
        out_shape=out_shape,
        compiler_params=pltpu.CompilerParams(
            dimension_semantics=("parallel", "arbitrary"),   # splits parallel; vocab reduce
            vmem_limit_bytes=vmem_limit),
    )(*inputs)

    # ---- tiny cross-split online-softmax combine + OutputLayer (plain JAX) ------
    m = jnp.max(m_p, axis=0)                                 # (M_pad, 1)
    alpha = jnp.exp(m_p - m)                                 # (S, M_pad, 1)
    l = jnp.sum(alpha * l_p, axis=0)                         # (M_pad, 1)
    acc = jnp.sum(alpha * acc_p, axis=0)                     # (M_pad, d_e)
    s_gold = jnp.sum(sg_p, axis=0)                           # (M_pad, 1)

    pick = acc / l                                           # exact softmax normalization
    out = (pick @ w_out + b_out)[:num_mentions].astype(hidden_state.dtype)

    # NLLLoss(ignore_index=NIL_ENTITY), mean over non-ignored mentions
    nll = ((m + jnp.log(l)) - s_gold)[:num_mentions, 0]      # logsumexp - gold logit
    valid = gold_vec != NIL_ENTITY
    nll = jnp.where(valid, nll, 0.0)                         # mask BEFORE sum (no 0*inf)
    count = jnp.sum(valid.astype(jnp.float32))
    loss = jnp.where(count > 0.0, jnp.sum(nll) / jnp.maximum(count, 1.0), 0.0)

    # memory_output[start_positions] = OutputLayer(pick_entity_embedding)
    memory_output = jnp.zeros_like(hidden_state).at[:, seq - 1, :].set(out)
    return loss, memory_output, None


def init_params(key, d_model, d_entity_embed, entity_vocab_size, init_std=0.02):
    k1, k2, k3 = jax.random.split(key, 3)
    return {
        # InputLayer: Linear(d_model -> d_entity_embed); weight ~ N(0, std), bias = 0
        "w_in": init_std * jax.random.normal(k1, (d_model, d_entity_embed), jnp.float32),
        "b_in": jnp.zeros((1, d_entity_embed), jnp.float32),
        # EntityEmbedding: nn.Linear weight of shape (d_entity_embed, entity_vocab_size)
        "e_w": init_std * jax.random.normal(k2, (d_entity_embed, entity_vocab_size), jnp.float32),
        # OutputLayer: Linear(d_entity_embed -> d_model); weight ~ N(0, std), bias = 0
        "w_out": init_std * jax.random.normal(k3, (d_entity_embed, d_model), jnp.float32),
        "b_out": jnp.zeros((1, d_model), jnp.float32),
    }


def _reference_forward(hidden_state, entity_link, prepared, entity_mask=None):
    """Dense JAX reference (uses the same bf16-stored e_w) for numerical validation."""
    seq = hidden_state.shape[1]
    vocab = prepared["vocab"]
    mention = hidden_state[:, seq - 1, :]
    gold = entity_link[:, seq - 1]
    q = mention @ prepared["w_in"] + prepared["b_in"]
    e_w = prepared["e_w_vmajor"][:vocab].astype(jnp.float32).T          # (d_e, V)
    s = q @ e_w
    if entity_mask is not None:
        s = jnp.where(entity_mask.astype(bool)[None, :], _NEG_FILL, s)
    logw = jax.nn.log_softmax(s, axis=-1)
    nll = -jnp.take_along_axis(logw, gold[:, None], axis=1)[:, 0]
    valid = gold != NIL_ENTITY
    loss = jnp.sum(jnp.where(valid, nll, 0.0)) / jnp.maximum(jnp.sum(valid), 1)
    pick = jax.nn.softmax(s, axis=-1) @ e_w.T
    out = pick @ prepared["w_out"] + prepared["b_out"]
    memory_output = jnp.zeros_like(hidden_state).at[:, seq - 1, :].set(out)
    return loss, memory_output


if __name__ == "__main__":
    batch, seq = 2, 8
    d_model, d_entity_embed, entity_vocab_size = 32, 16, 64

    root = jax.random.PRNGKey(0)
    kp, kh, ki, ke = jax.random.split(root, 4)

    params = init_params(kp, d_model, d_entity_embed, entity_vocab_size)
    # One-time weight preparation (pad + transpose + bf16 cast); not per-step work.
    prepared = prepare_entity_memory(params, num_splits=2)

    hidden_state = jax.random.normal(kh, (batch, seq, d_model), jnp.float32)
    input_ids = jax.random.randint(ki, (batch, seq), 4, 100, jnp.int32)
    # last position of each row is the entity-start token (last_entity_only path)
    input_ids = input_ids.at[:, seq - 1].set(ENTITY_START_TOKEN_ID)
    # gold linked entities at the mention positions (non-NIL, kept in the unmasked range)
    entity_link = jnp.full((batch, seq), NIL_ENTITY, jnp.int32)
    gold_ids = jax.random.randint(ke, (batch,), 1, 32, jnp.int32)
    entity_link = entity_link.at[:, seq - 1].set(gold_ids)

    # --- no entity_mask -----------------------------------------------------------
    loss, memory_output, topk_indices = entity_memory_forward(
        input_ids, hidden_state, entity_link, prepared, entity_mask=None)
    jax.block_until_ready((loss, memory_output))
    ref_loss, ref_out = _reference_forward(hidden_state, entity_link, prepared, None)
    assert memory_output.shape == (batch, seq, d_model)
    assert jnp.isfinite(loss)
    assert jnp.allclose(loss, ref_loss, atol=1e-2), (loss, ref_loss)
    assert jnp.allclose(memory_output, ref_out, atol=1e-2)

    # --- with an entity_mask (mask the upper half of the entity vocab) -------------
    entity_mask = (jnp.arange(entity_vocab_size) >= 32).astype(jnp.float32)
    loss_m, memory_output_m, _ = entity_memory_forward(
        input_ids, hidden_state, entity_link, prepared, entity_mask=entity_mask)
    jax.block_until_ready((loss_m, memory_output_m))
    ref_loss_m, ref_out_m = _reference_forward(hidden_state, entity_link, prepared, entity_mask)
    assert jnp.isfinite(loss_m)
    assert jnp.allclose(loss_m, ref_loss_m, atol=1e-2), (loss_m, ref_loss_m)
    assert jnp.allclose(memory_output_m, ref_out_m, atol=1e-2)

    print("KERNEL_OK")
</pallas_src>

<mosaic_0001>
module attributes {stable_mosaic.version = 11 : i64} {
  func.func @_entity_memory_kernel(%arg0: i32, %arg1: i32, %arg2: memref<8x32xf32, #tpu.memory_space<vmem>>, %arg3: memref<8x1xi32, #tpu.memory_space<vmem>>, %arg4: memref<32x16xf32, #tpu.memory_space<vmem>>, %arg5: memref<1x16xf32, #tpu.memory_space<vmem>>, %arg6: memref<256x16xbf16, #tpu.memory_space<vmem>>, %arg7: memref<1x8x1xf32, #tpu.memory_space<vmem>>, %arg8: memref<1x8x1xf32, #tpu.memory_space<vmem>>, %arg9: memref<1x8x1xf32, #tpu.memory_space<vmem>>, %arg10: memref<1x8x16xf32, #tpu.memory_space<vmem>>, %arg11: memref<8x16xbf16, #tpu.memory_space<vmem>>) attributes {dimension_semantics = [#tpu.dimension_semantics<parallel>, #tpu.dimension_semantics<arbitrary>], iteration_bounds = array<i64: 2, 1>, scalar_prefetch = 0 : i64, scratch_operands = 1 : i64, tpu.core_type = #tpu.core_type<tc>, window_params = [{pipeline_mode = #tpu.pipeline_mode<synchronous>, transform_indices = @transform_0, window_bounds = array<i64: 8, 32>}, {pipeline_mode = #tpu.pipeline_mode<synchronous>, transform_indices = @transform_1, window_bounds = array<i64: 8, 1>}, {pipeline_mode = #tpu.pipeline_mode<synchronous>, transform_indices = @transform_2, window_bounds = array<i64: 32, 16>}, {pipeline_mode = #tpu.pipeline_mode<synchronous>, transform_indices = @transform_3, window_bounds = array<i64: 1, 16>}, {transform_indices = @transform_4, window_bounds = array<i64: 256, 16>}, {transform_indices = @transform_5, window_bounds = array<i64: 1, 8, 1>}, {transform_indices = @transform_6, window_bounds = array<i64: 1, 8, 1>}, {transform_indices = @transform_7, window_bounds = array<i64: 1, 8, 1>}, {transform_indices = @transform_8, window_bounds = array<i64: 1, 8, 16>}]} {
    %c1_i32 = arith.constant 1 : i32
    %0 = arith.muli %arg0, %c1_i32 : i32
    %1 = arith.addi %0, %arg1 : i32
    %c0_i32 = arith.constant 0 : i32
    %2 = arith.cmpi eq, %arg1, %c0_i32 : i32
    %3 = arith.extui %2 : i1 to i32
    %c0_i32_0 = arith.constant 0 : i32
    %4 = arith.cmpi ne, %3, %c0_i32_0 : i32
    scf.if %4 {
      %c0_37 = arith.constant 0 : index
      %c0_38 = arith.constant 0 : index
      %63 = vector.load %arg2[%c0_37, %c0_38] : memref<8x32xf32, #tpu.memory_space<vmem>>, vector<8x32xf32>
      %c0_39 = arith.constant 0 : index
      %c0_40 = arith.constant 0 : index
      %64 = vector.load %arg4[%c0_39, %c0_40] : memref<32x16xf32, #tpu.memory_space<vmem>>, vector<32x16xf32>
      %cst_41 = arith.constant dense<0.000000e+00> : vector<8x16xf32>
      %65 = tpu.matmul %63, %64, %cst_41 {dimension_numbers = #tpu.dot_dimension_numbers<[1], [0], [0], [1], [0, 0, 1, 1], [], []>} : vector<8x32xf32>, vector<32x16xf32>, vector<8x16xf32> -> vector<8x16xf32>
      %c0_42 = arith.constant 0 : index
      %c0_43 = arith.constant 0 : index
      %66 = vector.load %arg5[%c0_42, %c0_43] : memref<1x16xf32, #tpu.memory_space<vmem>>, vector<1x16xf32>
      %67 = vector.broadcast %66 : vector<1x16xf32> to vector<8x16xf32>
      %68 = arith.addf %65, %67 : vector<8x16xf32>
      %69 = arith.truncf %68 : vector<8x16xf32> to vector<8x16xbf16>
      %c0_44 = arith.constant 0 : index
      %c0_45 = arith.constant 0 : index
      %70 = vector.load %arg11[%c0_44, %c0_45] : memref<8x16xbf16, #tpu.memory_space<vmem>>, vector<8x16xbf16>
      tpu.vector_store %arg11[%c0_44, %c0_45], %69 {strides = array<i32>} : memref<8x16xbf16, #tpu.memory_space<vmem>>, vector<8x16xbf16>,
      %cst_46 = arith.constant 0xFF800000 : f32
      %71 = vector.broadcast %cst_46 : f32 to vector<8x1xf32>
      %c0_47 = arith.constant 0 : index
      %c0_48 = arith.constant 0 : index
      %c0_49 = arith.constant 0 : index
      %72 = vector.load %arg7[%c0_47, %c0_48, %c0_49] : memref<1x8x1xf32, #tpu.memory_space<vmem>>, vector<1x8x1xf32>
      %73 = vector.shape_cast %72 : vector<1x8x1xf32> to vector<8x1xf32>
      %74 = vector.shape_cast %71 : vector<8x1xf32> to vector<1x8x1xf32>
      tpu.vector_store %arg7[%c0_47, %c0_48, %c0_49], %74 {strides = array<i32>} : memref<1x8x1xf32, #tpu.memory_space<vmem>>, vector<1x8x1xf32>,
      %cst_50 = arith.constant 0.000000e+00 : f32
      %75 = vector.broadcast %cst_50 : f32 to vector<8x1xf32>
      %c0_51 = arith.constant 0 : index
      %c0_52 = arith.constant 0 : index
      %c0_53 = arith.constant 0 : index
      %76 = vector.load %arg8[%c0_51, %c0_52, %c0_53] : memref<1x8x1xf32, #tpu.memory_space<vmem>>, vector<1x8x1xf32>
      %77 = vector.shape_cast %76 : vector<1x8x1xf32> to vector<8x1xf32>
      %78 = vector.shape_cast %75 : vector<8x1xf32> to vector<1x8x1xf32>
      tpu.vector_store %arg8[%c0_51, %c0_52, %c0_53], %78 {strides = array<i32>} : memref<1x8x1xf32, #tpu.memory_space<vmem>>, vector<1x8x1xf32>,
      %cst_54 = arith.constant 0.000000e+00 : f32
      %79 = vector.broadcast %cst_54 : f32 to vector<8x1xf32>
      %c0_55 = arith.constant 0 : index
      %c0_56 = arith.constant 0 : index
      %c0_57 = arith.constant 0 : index
      %80 = vector.load %arg9[%c0_55, %c0_56, %c0_57] : memref<1x8x1xf32, #tpu.memory_space<vmem>>, vector<1x8x1xf32>
      %81 = vector.shape_cast %80 : vector<1x8x1xf32> to vector<8x1xf32>
      %82 = vector.shape_cast %79 : vector<8x1xf32> to vector<1x8x1xf32>
      tpu.vector_store %arg9[%c0_55, %c0_56, %c0_57], %82 {strides = array<i32>} : memref<1x8x1xf32, #tpu.memory_space<vmem>>, vector<1x8x1xf32>,
      %cst_58 = arith.constant 0.000000e+00 : f32
      %83 = vector.broadcast %cst_58 : f32 to vector<8x16xf32>
      %c0_59 = arith.constant 0 : index
      %c0_60 = arith.constant 0 : index
      %c0_61 = arith.constant 0 : index
      %84 = vector.load %arg10[%c0_59, %c0_60, %c0_61] : memref<1x8x16xf32, #tpu.memory_space<vmem>>, vector<1x8x16xf32>
      %85 = vector.shape_cast %84 : vector<1x8x16xf32> to vector<8x16xf32>
      %86 = vector.shape_cast %83 : vector<8x16xf32> to vector<1x8x16xf32>
      tpu.vector_store %arg10[%c0_59, %c0_60, %c0_61], %86 {strides = array<i32>} : memref<1x8x16xf32, #tpu.memory_space<vmem>>, vector<1x8x16xf32>,
    } else {
    }
    %c0 = arith.constant 0 : index
    %c0_1 = arith.constant 0 : index
    %5 = vector.load %arg6[%c0, %c0_1] : memref<256x16xbf16, #tpu.memory_space<vmem>>, vector<256x16xbf16>
    %c0_2 = arith.constant 0 : index
    %c0_3 = arith.constant 0 : index
    %6 = vector.load %arg11[%c0_2, %c0_3] : memref<8x16xbf16, #tpu.memory_space<vmem>>, vector<8x16xbf16>
    %cst = arith.constant dense<0.000000e+00> : vector<8x256xf32>
    %7 = tpu.matmul %6, %5, %cst {dimension_numbers = #tpu.dot_dimension_numbers<[1], [1], [0], [0], [0, 0, 1, 0], [], []>} : vector<8x16xbf16>, vector<256x16xbf16>, vector<8x256xf32> -> vector<8x256xf32>
    %8 = tpu.iota {dimensions = array<i32: 1>} : vector<8x256xi32>
    %c256_i32 = arith.constant 256 : i32
    %9 = arith.muli %1, %c256_i32 : i32
    %c64_i32 = arith.constant 64 : i32
    %10 = arith.subi %c64_i32, %9 : i32
    %11 = vector.broadcast %10 : i32 to vector<8x256xi32>
    %12 = arith.cmpi sge, %8, %11 : vector<8x256xi32>
    %cst_4 = arith.constant -3.40282347E+38 : f32
    %13 = vector.broadcast %cst_4 : f32 to vector<8x256xf32>
    %14 = arith.select %12, %13, %7 : vector<8x256xi1>, vector<8x256xf32>
    %c0_5 = arith.constant 0 : index
    %c0_6 = arith.constant 0 : index
    %c0_7 = arith.constant 0 : index
    %15 = vector.load %arg9[%c0_5, %c0_6, %c0_7] : memref<1x8x1xf32, #tpu.memory_space<vmem>>, vector<1x8x1xf32>
    %16 = vector.shape_cast %15 : vector<1x8x1xf32> to vector<8x1xf32>
    %c0_8 = arith.constant 0 : index
    %c0_9 = arith.constant 0 : index
    %17 = vector.load %arg3[%c0_8, %c0_9] : memref<8x1xi32, #tpu.memory_space<vmem>>, vector<8x1xi32>
    %c256_i32_10 = arith.constant 256 : i32
    %18 = arith.muli %1, %c256_i32_10 : i32
    %19 = vector.broadcast %18 : i32 to vector<8x1xi32>
    %20 = arith.subi %17, %19 : vector<8x1xi32>
    %21 = vector.broadcast %20 : vector<8x1xi32> to vector<8x256xi32>
    %22 = arith.cmpi eq, %8, %21 : vector<8x256xi32>
    %cst_11 = arith.constant 0.000000e+00 : f32
    %23 = vector.broadcast %cst_11 : f32 to vector<8x256xf32>
    %24 = arith.select %22, %14, %23 : vector<8x256xi1>, vector<8x256xf32>
    %cst_12 = arith.constant dense<0.000000e+00> : vector<8xf32>
    %25 = vector.multi_reduction <add>, %24, %cst_12 [1] : vector<8x256xf32> to vector<8xf32>
    %26 = vector.shape_cast %25 : vector<8xf32> to vector<8x1xf32>
    %27 = arith.addf %16, %26 : vector<8x1xf32>
    %c0_13 = arith.constant 0 : index
    %c0_14 = arith.constant 0 : index
    %c0_15 = arith.constant 0 : index
    %28 = vector.load %arg9[%c0_13, %c0_14, %c0_15] : memref<1x8x1xf32, #tpu.memory_space<vmem>>, vector<1x8x1xf32>
    %29 = vector.shape_cast %28 : vector<1x8x1xf32> to vector<8x1xf32>
    %30 = vector.shape_cast %27 : vector<8x1xf32> to vector<1x8x1xf32>
    tpu.vector_store %arg9[%c0_13, %c0_14, %c0_15], %30 {strides = array<i32>} : memref<1x8x1xf32, #tpu.memory_space<vmem>>, vector<1x8x1xf32>,
    %c0_16 = arith.constant 0 : index
    %c0_17 = arith.constant 0 : index
    %c0_18 = arith.constant 0 : index
    %31 = vector.load %arg7[%c0_16, %c0_17, %c0_18] : memref<1x8x1xf32, #tpu.memory_space<vmem>>, vector<1x8x1xf32>
    %32 = vector.shape_cast %31 : vector<1x8x1xf32> to vector<8x1xf32>
    %cst_19 = arith.constant dense<0xFF800000> : vector<8xf32>
    %33 = vector.multi_reduction <maximumf>, %14, %cst_19 [1] : vector<8x256xf32> to vector<8xf32>
    %34 = vector.shape_cast %33 : vector<8xf32> to vector<8x1xf32>
    %35 = arith.maximumf %32, %34 : vector<8x1xf32>
    %36 = arith.subf %32, %35 : vector<8x1xf32>
    %37 = math.exp %36 : vector<8x1xf32>
    %38 = vector.broadcast %35 : vector<8x1xf32> to vector<8x256xf32>
    %39 = arith.subf %14, %38 : vector<8x256xf32>
    %40 = math.exp %39 : vector<8x256xf32>
    %c0_20 = arith.constant 0 : index
    %c0_21 = arith.constant 0 : index
    %c0_22 = arith.constant 0 : index
    %41 = vector.load %arg8[%c0_20, %c0_21, %c0_22] : memref<1x8x1xf32, #tpu.memory_space<vmem>>, vector<1x8x1xf32>
    %42 = vector.shape_cast %41 : vector<1x8x1xf32> to vector<8x1xf32>
    %43 = arith.mulf %37, %42 : vector<8x1xf32>
    %cst_23 = arith.constant dense<0.000000e+00> : vector<8xf32>
    %44 = vector.multi_reduction <add>, %40, %cst_23 [1] : vector<8x256xf32> to vector<8xf32>
    %45 = vector.shape_cast %44 : vector<8xf32> to vector<8x1xf32>
    %46 = arith.addf %43, %45 : vector<8x1xf32>
    %c0_24 = arith.constant 0 : index
    %c0_25 = arith.constant 0 : index
    %c0_26 = arith.constant 0 : index
    %47 = vector.load %arg8[%c0_24, %c0_25, %c0_26] : memref<1x8x1xf32, #tpu.memory_space<vmem>>, vector<1x8x1xf32>
    %48 = vector.shape_cast %47 : vector<1x8x1xf32> to vector<8x1xf32>
    %49 = vector.shape_cast %46 : vector<8x1xf32> to vector<1x8x1xf32>
    tpu.vector_store %arg8[%c0_24, %c0_25, %c0_26], %49 {strides = array<i32>} : memref<1x8x1xf32, #tpu.memory_space<vmem>>, vector<1x8x1xf32>,
    %c0_27 = arith.constant 0 : index
    %c0_28 = arith.constant 0 : index
    %c0_29 = arith.constant 0 : index
    %50 = vector.load %arg10[%c0_27, %c0_28, %c0_29] : memref<1x8x16xf32, #tpu.memory_space<vmem>>, vector<1x8x16xf32>
    %51 = vector.shape_cast %50 : vector<1x8x16xf32> to vector<8x16xf32>
    %52 = vector.broadcast %37 : vector<8x1xf32> to vector<8x16xf32>
    %53 = arith.mulf %52, %51 : vector<8x16xf32>
    %54 = arith.truncf %40 : vector<8x256xf32> to vector<8x256xbf16>
    %cst_30 = arith.constant dense<0.000000e+00> : vector<8x16xf32>
    %55 = tpu.matmul %54, %5, %cst_30 {dimension_numbers = #tpu.dot_dimension_numbers<[1], [0], [0], [1], [0, 0, 1, 1], [], []>} : vector<8x256xbf16>, vector<256x16xbf16>, vector<8x16xf32> -> vector<8x16xf32>
    %56 = arith.addf %53, %55 : vector<8x16xf32>
    %c0_31 = arith.constant 0 : index
    %c0_32 = arith.constant 0 : index
    %c0_33 = arith.constant 0 : index
    %57 = vector.load %arg10[%c0_31, %c0_32, %c0_33] : memref<1x8x16xf32, #tpu.memory_space<vmem>>, vector<1x8x16xf32>
    %58 = vector.shape_cast %57 : vector<1x8x16xf32> to vector<8x16xf32>
    %59 = vector.shape_cast %56 : vector<8x16xf32> to vector<1x8x16xf32>
    tpu.vector_store %arg10[%c0_31, %c0_32, %c0_33], %59 {strides = array<i32>} : memref<1x8x16xf32, #tpu.memory_space<vmem>>, vector<1x8x16xf32>,
    %c0_34 = arith.constant 0 : index
    %c0_35 = arith.constant 0 : index
    %c0_36 = arith.constant 0 : index
    %60 = vector.load %arg7[%c0_34, %c0_35, %c0_36] : memref<1x8x1xf32, #tpu.memory_space<vmem>>, vector<1x8x1xf32>
    %61 = vector.shape_cast %60 : vector<1x8x1xf32> to vector<8x1xf32>
    %62 = vector.shape_cast %35 : vector<8x1xf32> to vector<1x8x1xf32>
    tpu.vector_store %arg7[%c0_34, %c0_35, %c0_36], %62 {strides = array<i32>} : memref<1x8x1xf32, #tpu.memory_space<vmem>>, vector<1x8x1xf32>,
    return
  }
  func.func @transform_0(%arg0: i32, %arg1: i32) -> (i32, i32) {
    %c0_i32 = arith.constant 0 : i32
    %c0_i32_0 = arith.constant 0 : i32
    %c0_i32_1 = arith.constant 0 : i32
    return %c0_i32, %c0_i32_0 : i32, i32
  }
  func.func @transform_1(%arg0: i32, %arg1: i32) -> (i32, i32) {
    %c0_i32 = arith.constant 0 : i32
    %c0_i32_0 = arith.constant 0 : i32
    %c0_i32_1 = arith.constant 0 : i32
    return %c0_i32, %c0_i32_0 : i32, i32
  }
  func.func @transform_2(%arg0: i32, %arg1: i32) -> (i32, i32) {
    %c0_i32 = arith.constant 0 : i32
    %c0_i32_0 = arith.constant 0 : i32
    %c0_i32_1 = arith.constant 0 : i32
    return %c0_i32, %c0_i32_0 : i32, i32
  }
  func.func @transform_3(%arg0: i32, %arg1: i32) -> (i32, i32) {
    %c0_i32 = arith.constant 0 : i32
    %c0_i32_0 = arith.constant 0 : i32
    %c0_i32_1 = arith.constant 0 : i32
    return %c0_i32, %c0_i32_0 : i32, i32
  }
  func.func @transform_4(%arg0: i32, %arg1: i32) -> (i32, i32) {
    %c1_i32 = arith.constant 1 : i32
    %0 = arith.muli %arg0, %c1_i32 : i32
    %1 = arith.addi %0, %arg1 : i32
    %c0_i32 = arith.constant 0 : i32
    %c0_i32_0 = arith.constant 0 : i32
    return %1, %c0_i32 : i32, i32
  }
  func.func @transform_5(%arg0: i32, %arg1: i32) -> (i32, i32, i32) {
    %c0_i32 = arith.constant 0 : i32
    %c0_i32_0 = arith.constant 0 : i32
    %c0_i32_1 = arith.constant 0 : i32
    return %arg0, %c0_i32, %c0_i32_0 : i32, i32, i32
  }
  func.func @transform_6(%arg0: i32, %arg1: i32) -> (i32, i32, i32) {
    %c0_i32 = arith.constant 0 : i32
    %c0_i32_0 = arith.constant 0 : i32
    %c0_i32_1 = arith.constant 0 : i32
    return %arg0, %c0_i32, %c0_i32_0 : i32, i32, i32
  }
  func.func @transform_7(%arg0: i32, %arg1: i32) -> (i32, i32, i32) {
    %c0_i32 = arith.constant 0 : i32
    %c0_i32_0 = arith.constant 0 : i32
    %c0_i32_1 = arith.constant 0 : i32
    return %arg0, %c0_i32, %c0_i32_0 : i32, i32, i32
  }
  func.func @transform_8(%arg0: i32, %arg1: i32) -> (i32, i32, i32) {
    %c0_i32 = arith.constant 0 : i32
    %c0_i32_0 = arith.constant 0 : i32
    %c0_i32_1 = arith.constant 0 : i32
    return %arg0, %c0_i32, %c0_i32_0 : i32, i32, i32
  }
}

</mosaic_0001>

<bundles_post_ra>
// kernel: tpu_custom_call.1
= control target key start
LH: loop header
LB: loop body
LE: loop exit
PB: predicated region body
PF: predicated region fallthrough
CT: control target
= control target key end

     0   :  { %s2260_s0 = inlined_call_operand.hbm [shape: f32[8,32], index: 0, kind: input, shape index: {}]   ;;  %s2261_s1 = inlined_call_operand.hbm [shape: s32[8,1], index: 1, kind: input, shape index: {}]   ;;  %s2262_s2 = inlined_call_operand.hbm [shape: f32[32,16], index: 2, kind: input, shape index: {}]   ;;  %s2263_s3 = inlined_call_operand.hbm [shape: f32[1,16], index: 3, kind: input, shape index: {}]   ;;  %s2264_s4 = inlined_call_operand.hbm [shape: bf16[512,16], index: 4, kind: input, shape index: {}]   ;;  %s2265_s5 = inlined_call_operand.hbm [shape: f32[2,8,1], index: 5, kind: output, shape index: {0}]   ;;  %s2266_s6 = inlined_call_operand.hbm [shape: f32[2,8,1], index: 6, kind: output, shape index: {1}]   ;;  %s2267_s7 = inlined_call_operand.hbm [shape: f32[2,8,1], index: 7, kind: output, shape index: {2}]   ;;  %s2268_s8 = inlined_call_operand.hbm [shape: f32[2,8,16], index: 8, kind: output, shape index: {3}]  }
   0x1   :  { %2276 = sst [smem:[#allocation27_spill]] %s2260_s0 }
   0x2   :  { %2277 = sst [smem:[#allocation28_spill]] %s2261_s1 }
   0x3   :  { %14 = vsyncpa [#allocation4], 0 }
   0x4   :  { %15 = vsyncpa [#allocation7], 0 }
   0x5   :  { %16 = vsyncpa [#allocation10], 0 }
   0x6   :  { %17 = vsyncpa [#allocation5], 0 }
   0x7   :  { %19 = vsyncpa [#allocation5 + $0x1], 0 }
   0x8   :  { %20 = vsyncpa [#allocation14], 0 }
   0x9   :  { %22 = vsyncpa [#allocation14 + $0x1], 0 }
   0xa   :  { %23 = vsyncpa [#allocation17], 0 }
   0xb   :  { %25 = vsyncpa [#allocation17 + $0x1], 0  ;;  %s1791_s27 = smov 0   ;;  %s1793_s28 = smov 0  }
   0xc   :  { %s1795_s29 = smov 0   ;;  %s1797_s30 = smov 0  }
   0xd   :  { %s1799_s9 = smov 0   ;;  %s1801_s10 = smov 0  }
   0xe LB: > { %2278 = sst [smem:[#allocation25_spill]] %s1706_s27  ;;  %s1822_s11 = sadd.s32 4294967295, %s1726_s10   ;;  %s1726_s10 = sphi %s1801_s10, %s31_s10   ;;  %s1722_s9 = sphi %s1799_s9, %s2308_s9   ;;  %s1718_s30 = sphi %s1797_s30, %s2307_s30   ;;  %s1714_s29 = sphi %s1795_s29, %s2306_s29   ;;  %s1710_s28 = sphi %s1793_s28, %s2305_s28   ;;  %s1706_s27 = sphi %s1791_s27, %s2304_s27  }
   0xf   : > { %s2269_s12 = sadd.s32 4294967294, %s1726_s10   ;;  %p149_p0 = scmp.ne.s32.totalorder %s1710_s28, %s1706_s27 }
  0x10   : > { %p2270_p1 = scmp.eq.s32.totalorder %s1822_s11, 0  ;;  %p179_p3 = scmp.eq.s32.totalorder %s2269_s12, 1 }
  0x11   : > { %p1127_p5 = scmp.ge.s32.totalorder %s1726_s10, 1  ;;  %p264_p7 = scmp.lt.s32.totalorder %s1726_s10, 3 }
  0x12   : > { %p1833_p4 = por %p2270_p1, %p149_p0  ;;  %p1838_p6 = por %p179_p3, %p149_p0 }
  0x13   : > { %p1843_p8 = pnand %p1127_p5, %p264_p7  ;;  %s1728_s16 = smov [#allocation3]  }
  0x14   : > { %s2279_s13 = scalar_select %p1833_p4, 1, 0 }
  0x15   : > { %s2280_s14 = scalar_select %p1838_p6, 1, 0 }
  0x16   : > { %s2282_s15 = scalar_select %p1843_p8, 1, 0 }
  0x17   : > { %2281 = sst [smem:[#allocation26_spill]] %s2280_s14  ;;  %s277_s17 = sshll.u32 %s1728_s16, 4  ;;  %s278_s17 = int_to_ptr.vmem [resolvable:$true] %s277_s17 }
  0x18   : > { %p1273_p10 = pneg %p1843_p8  ;;  %s1729_s18 = smov [#allocation6]  }
  0x19   : > { %s288_s19 = sshll.u32 %s1729_s18, 4  ;;  %s1730_s21 = smov [#allocation8]   ;;  %s1856_s19 = int_to_ptr.vmem [resolvable:$true] %s288_s19 }
  0x1a   : > { %p1852_p11 = pnand %p1273_p10, %p2270_p1  ;;  %s298_s22 = sshll.u32 %s1730_s21, 4  ;;  %s1858_s22 = int_to_ptr.vmem [resolvable:$true] %s298_s22 }
  0x1b   : > { %s2284_s0 = sld [smem:[#allocation27_spill]] }
  0x1c   : > { %p1868_p13 = pneg %p1852_p11 }
  0x21   : > { %s1398_s25 = scalar_lea.hbm %s2284_s0, 128 }
  0x22   : > { %p1399_p12 = scmp.ne.s32.totalorder %s2284_s0, %s1398_s25  ;;  %p1405_p5 = scmp.lt.u32.totalorder %s1398_s25, %s2284_s0 }
  0x24   : > { %p1401_p0 = pnand %p1868_p13, %p1399_p12 }
  0x26   : > { %p1402_p3 = pneg %p1401_p0 }
  0x28   : > { %p1407_p7 = pnand %p1405_p5, %p1402_p3 }
  0x2a   : > { %1410 = shalt.err (!%p1407_p7)
}
  0x2b   : > { %s1411_s23 = scalar_lea.vmem %s278_s17, 128  ;;  %p1419_p2 = scmp.lt.s32.totalorder %s278_s17, %s278_s17 }
  0x2c   : > { %p1412_p10 = scmp.ne.s32.totalorder %s278_s17, %s1411_s23  ;;  %p1420_p6 = scmp.lt.s32.totalorder %s1411_s23, %s1411_s23 }
  0x2e   : > { %p1414_p9 = pnand %p1412_p10, %p1868_p13  ;;  %p1421_p4 = por %p1420_p6, %p1419_p2 }
  0x30   : > { %p1415_p1 = pneg %p1414_p9 }
  0x32   : > { %p1422_p8 = pnand %p1421_p4, %p1415_p1 }
  0x34   : > { %1425 = shalt.err (!%p1422_p8)
}
  0x35   : > { %1276 = dma.hbm_to_vmem [thread:$0]  (!%p1852_p11), %s2284_s0, 128, %s278_s17, [#allocation4]  }
  0x36   : > { %s2286_s1 = sld [smem:[#allocation28_spill]] }
  0x3c   : > { %s1426_s16 = scalar_lea.hbm %s2286_s1, 128 }
  0x3d   : > { %p1427_p9 = scmp.ne.s32.totalorder %s2286_s1, %s1426_s16  ;;  %p1433_p1 = scmp.lt.u32.totalorder %s1426_s16, %s2286_s1 }
  0x3f   : > { %p1429_p12 = pnand %p1427_p9, %p1868_p13 }
  0x41   : > { %p1430_p2 = pneg %p1429_p12 }
  0x43   : > { %p1435_p4 = pnand %p1433_p1, %p1430_p2 }
  0x45   : > { %1438 = shalt.err (!%p1435_p4)
}
  0x46   : > { %s1439_s17 = scalar_lea.vmem %s1856_s19, 128  ;;  %p1447_p3 = scmp.lt.s32.totalorder %s1856_s19, %s1856_s19 }
  0x47   : > { %p1440_p6 = scmp.ne.s32.totalorder %s1856_s19, %s1439_s17  ;;  %p1448_p5 = scmp.lt.s32.totalorder %s1439_s17, %s1439_s17 }
  0x49   : > { %p1442_p8 = pnand %p1440_p6, %p1868_p13  ;;  %p1449_p7 = por %p1448_p5, %p1447_p3 }
  0x4b   : > { %p1443_p0 = pneg %p1442_p8 }
  0x4d   : > { %p1450_p10 = pnand %p1449_p7, %p1443_p0 }
  0x4f   : > { %1453 = shalt.err (!%p1450_p10)
}
  0x50   : > { %1279 = dma.hbm_to_vmem [thread:$0]  (!%p1852_p11), %s2286_s1, 128, %s1856_s19, [#allocation7]  }
  0x51   : > { %s1454_s12 = scalar_lea.hbm %s2262_s2, 512 }
  0x52   : > { %p1455_p9 = scmp.ne.s32.totalorder %s2262_s2, %s1454_s12  ;;  %p1461_p1 = scmp.lt.u32.totalorder %s1454_s12, %s2262_s2 }
  0x54   : > { %p1457_p12 = pnand %p1455_p9, %p1868_p13 }
  0x56   : > { %p1458_p2 = pneg %p1457_p12 }
  0x58   : > { %p1463_p4 = pnand %p1461_p1, %p1458_p2 }
  0x5a   : > { %1466 = shalt.err (!%p1463_p4)
}
  0x5b   : > { %s1467_s19 = scalar_lea.vmem %s1858_s22, 512  ;;  %p1475_p3 = scmp.lt.s32.totalorder %s1858_s22, %s1858_s22 }
  0x5c   : > { %p1468_p6 = scmp.ne.s32.totalorder %s1858_s22, %s1467_s19  ;;  %p1476_p5 = scmp.lt.s32.totalorder %s1467_s19, %s1467_s19 }
  0x5e   : > { %p1470_p8 = pnand %p1468_p6, %p1868_p13  ;;  %p1477_p7 = por %p1476_p5, %p1475_p3 }
  0x60   : > { %p1471_p0 = pneg %p1470_p8 }
  0x62   : > { %p1478_p10 = pnand %p1477_p7, %p1471_p0 }
  0x64   : > { %1481 = shalt.err (!%p1478_p10)
}
  0x65   : > { %s1731_s17 = smov 128   ;;  %s1732_s27 = smov 8  }
  0x66   : > { %1282 = dma.hbm_to_vmem [thread:$0]  (!%p1852_p11), %s2262_s2, 512, %s1858_s22, [#allocation7], %s1731_s17, %s1731_s17, %s1732_s27  }
  0x67   : > { %s1733_s26 = smov [#allocation9]   ;;  %s1482_s21 = scalar_lea.hbm %s2263_s3, 16 }
  0x68   : > { %s312_s12 = sshll.u32 %s1733_s26, 4  ;;  %p1483_p9 = scmp.ne.s32.totalorder %s2263_s3, %s1482_s21  ;;  %s313_s12 = int_to_ptr.vmem [resolvable:$true] %s312_s12 }
  0x69   : > { %p1489_p1 = scmp.lt.u32.totalorder %s1482_s21, %s2263_s3 }
  0x6a   : > { %p1485_p12 = pnand %p1483_p9, %p1868_p13 }
  0x6c   : > { %p1486_p2 = pneg %p1485_p12 }
  0x6e   : > { %p1491_p4 = pnand %p1489_p1, %p1486_p2 }
  0x70   : > { %1494 = shalt.err (!%p1491_p4)
}
  0x71   : > { %s1495_s22 = scalar_lea.vmem %s313_s12, 16  ;;  %s1502_s17 = scalar_lea.vmem %s313_s12, 32 }
  0x72   : > { %p1496_p6 = scmp.ne.s32.totalorder %s313_s12, %s1495_s22  ;;  %p1503_p3 = scmp.lt.s32.totalorder %s313_s12, %s313_s12 }
  0x73   : > { %p1504_p5 = scmp.lt.s32.totalorder %s1502_s17, %s1495_s22 }
  0x74   : > { %p1498_p8 = pnand %p1496_p6, %p1868_p13 }
  0x75   : > { %p1505_p7 = por %p1504_p5, %p1503_p3 }
  0x76   : > { %p1499_p0 = pneg %p1498_p8 }
  0x78   : > { %p1506_p10 = pnand %p1505_p7, %p1499_p0 }
  0x7a   : > { %1509 = shalt.err (!%p1506_p10)
}
  0x7b   : > { %1285 = dma.hbm_to_vmem [thread:$0]  (!%p1852_p11), %s2263_s3, 16, %s313_s12, [#allocation10]  }
  0x7c   : > { %s43_s0 = sadd.s32 1, %s1722_s9  ;;  %s136_s1 = sadd.s32 1, %s1714_s29 }
  0x7d   : > { %p45_p13 = scmp.ge.s32.totalorder %s43_s0, 2  ;;  %p143_p9 = scmp.ne.s32.totalorder %s1714_s29, %s1710_s28 }
  0x7e   : > { %p144_p12 = scmp.eq.s32.totalorder %s1726_s10, 0  ;;  %p1307_p2 = scmp.lt.s32.totalorder %s1726_s10, 2 }
  0x7f   : > { %s2310_s0 = smov (%p45_p13, %s43_s0), 0  ;;  %p2287_p4 = scmp.eq.s32.totalorder %s1822_s11, 1 }
  0x80   : > { %p145_p1 = por %p144_p12, %p143_p9  ;;  %s133_s18 = ssub.s32 %s1722_s9, %s2310_s0 }
  0x81   : > { %p1958_p6 = por %p2287_p4, %p143_p9  ;;  %s323_s24 = sand.u32 1, %s1726_s10  }
  0x82   : > { %p134_p8 = scmp.eq.s32.totalorder %s133_s18, 0  ;;  %s325_s26 = sand.u32 1, %s1714_s29  }
  0x83   : > { %s1176_s12 = sshll.u32 %s1722_s9, 11  ;;  %s1133_s16 = sshll.u32 %s325_s26, 7 }
  0x84   : > { %s1968_s25 = scalar_select %p134_p8, %s1714_s29, %s136_s1  }
  0x85   : > { %s1973_s19 = scalar_lea.hbm %s2264_s4, %s1176_s12  ;;  %p1975_p11 = pnand %p1307_p2, %p145_p1 }
  0x86   : > { %s327_s17 = scalar_lea.vmem [#allocation11], %s1133_s16  ;;  %s1981_s14 = scalar_lea.sflag [#allocation4], %s323_s24 }
  0x87   : > { %s335_s27 = sshll.u32 %s327_s17, 4  ;;  %s1510_s1 = scalar_lea.hbm %s1973_s19, 2048  ;;  %s1979_s27 = int_to_ptr.vmem [resolvable:$true] %s335_s27 }
  0x88   : > { %p1511_p0 = scmp.ne.s32.totalorder %s1973_s19, %s1510_s1  ;;  %p1512_p3 = pneg %p1975_p11 }
  0x89   : > { %s1515_s12 = scalar_lea.hbm %s2264_s4, 4096  ;;  %p1516_p10 = scmp.lt.u32.totalorder %s1973_s19, %s2264_s4 }
  0x8a   : > { %p1513_p5 = pnand %p1512_p3, %p1511_p0  ;;  %p1517_p13 = scmp.lt.u32.totalorder %s1515_s12, %s1510_s1 }
  0x8b   : > { %p1519_p12 = scmp.lt.u32.totalorder %s1510_s1, %s1973_s19 }
  0x8c   : > { %p1514_p7 = pneg %p1513_p5  ;;  %p1518_p9 = por %p1517_p13, %p1516_p10 }
  0x8e   : > { %p1520_p2 = por %p1519_p12, %p1518_p9 }
  0x90   : > { %p1521_p1 = pnand %p1520_p2, %p1514_p7 }
  0x92   : > { %1524 = shalt.err (!%p1521_p1)
}
  0x93   : > { %s1525_s24 = scalar_lea.vmem %s1979_s27, 2048  ;;  %s1734_s16 = smov [#allocation11]  }
  0x94   : > { %p1526_p4 = scmp.ne.s32.totalorder %s1979_s27, %s1525_s24  ;;  %s1530_s17 = sshll.u32 %s1734_s16, 4  ;;  %s1531_s17 = int_to_ptr.vmem [resolvable:$false] %s1530_s17 }
  0x95   : > { %s1532_s18 = scalar_lea.vmem %s1531_s17, 4096  ;;  %p1533_p5 = scmp.lt.s32.totalorder %s1979_s27, %s1531_s17 }
  0x96   : > { %p1528_p8 = pnand %p1526_p4, %p1512_p3  ;;  %p1534_p10 = scmp.lt.s32.totalorder %s1532_s18, %s1525_s24 }
  0x98   : > { %p1529_p0 = pneg %p1528_p8  ;;  %p1535_p13 = por %p1534_p10, %p1533_p5 }
  0x9a   : > { %p1536_p9 = pnand %p1535_p13, %p1529_p0 }
  0x9c   : > { %1539 = shalt.err (!%p1536_p9)
}
  0x9d   : > { %s1735_s1 = smov 64   ;;  %s1736_s26 = smov 4  }
  0x9e   : > { %1289 = dma.hbm_to_vmem [thread:$0]  (!%p1975_p11), %s1973_s19, 2048, %s1979_s27, %s1981_s14, %s1735_s1, %s1735_s1, %s1736_s26  }
  0x9f   : > { %p2290_p3 = scmp.ne.s32.totalorder %s2282_s15, 0 }
  0xa0   : > { %p2291_p7 = scmp.eq.s32.totalorder (!%p2290_p3), %s1822_s11, 0 }
  0xa1   : > { %347 = sbr.rel (%p2290_p3) target bundleno = 1155 (0x483), region = 40 }
  0xa8   : > { %1677 = dma.done.wait (%p2291_p7), [#allocation4], 128   ;;  %p2292_p12 = pmov %p2291_p7 }
  0xa9   : > { %p2293_p2 = pmov %p2291_p7 }
  0xaa   : > { %1679 = vsyncadd (%p2292_p12), [#allocation4], 4294967168 }
  0xab   : > { %1681 = dma.done.wait (%p2293_p2), [#allocation7], 640   ;;  %p2294_p1 = pmov %p2293_p2 }
  0xad   : > { %1683 = vsyncadd (%p2294_p1), [#allocation7], 4294966656  ;;  %p2295_p4 = pmov %p2294_p1 }
  0xae   : > { %p2296_p11 = pmov %p2294_p1 }
  0xaf   : > { %1685 = dma.done.wait (%p2295_p4), [#allocation10], 16  }
  0xb0   : > { %1687 = vsyncadd (%p2296_p11), [#allocation10], 4294967280  ;;  %s2275_s15 = sand.u32 1, %s1822_s11   ;;  %s2025_s19 = sand.u32 1, %s1710_s28  }
  0xb1   : > { %s1141_s22 = sshll.u32 %s2025_s19, 7  ;;  %s366_s27 = scalar_lea.sflag [#allocation4], %s2275_s15 }
  0xb2   : > { %s2030_s14 = scalar_lea.vmem [#allocation11], %s1141_s22  ;;  %p2297_p8 = scmp.ne.s32.totalorder %s2279_s13, 0 }
  0xb4   : > { %1689 = dma.done.wait (%p2297_p8), %s366_s27, 2048  }
  0xb5   : > { %1691 = vsyncadd (%p2297_p8), %s366_s27, 4294965248  ;;  %s2037_s12 = sshll.u32 %s2025_s19, 3  ;;  %v1737_v0 = vmov 0.0|0.0   ;;  %vm1738_vm0 = vmmov 0   ;;  %v1739_v1 = vmov 0.0   ;;  %vm514_vm1 = vcmask 7168  }
  0xb6   : > { %1233 = vmatprep.subr.bf16.mxu0 %v1737_v0  ;;  %1230 = vmatprep.mubr.msk.f32.mxu0 %vm1738_vm0, %v1739_v1  ;;  %s2041_s21 = scalar_lea.vmem [#allocation13], %s2037_s12  ;;  %v426_v2 = vld [vmem:[#allocation8] sm:$0xff]  ;;  %v427_v3 = vld [vmem:[#allocation8 + $0x8] sm:$0xff]  ;;  %v428_v4 = vld [vmem:[#allocation8 + $0x10] sm:$0xff]  ;;  %vm518_vm2 = vcmask 130048   ;;  %vm437_vm3 = vcmask 261120   ;;  %v726_v44 = vlaneseq }
  0xb7   : > { %516 = vst.msk [vmem:[%s2041_s21] sm:$0xff] %vm514_vm1, %v1739_v1  ;;  %v1234_v5 = vpack.c.bf16 %v427_v3, %v426_v2  ;;  %v429_v6 = vld [vmem:[#allocation8 + $0x18] sm:$0xff]  ;;  %v1376_v7 = vld [vmem:[%s2030_s14 + $0x40] sm:$0xff]   ;;  %v1378_v10 = vld [vmem:[%s2030_s14 + $0x48] sm:$0xff]   ;;  %s1165_s13 = sshll.u32 %s1718_s30, 8  ;;  %v1740_v34 = vmov 0  }
  0xb8   : > { %v1237_v8 = vpack.c.bf16 %v429_v6, %v428_v4  ;;  %v1377_v9 = vld [vmem:[%s2030_s14] sm:$0xff]   ;;  %1239 = vmatprep.subr.msk.bf16.mxu1 %vm518_vm2, %v1376_v7  ;;  %v425_v12 = vld [vmem:[#allocation3] sm:$0xff]  ;;  %v1382_v17 = vld [vmem:[%s2030_s14 + $0x58] sm:$0xff]   ;;  %1375 = vset.pattern.permute.xlu1 %v1740_v34  ;;  %v738_v35 = vstv %s1165_s13  ;;  %vm512_vm4 = vcmask 125952   ;;  %s2082_s23 = scalar_lea.vmem [#allocation12], %s2037_s12  ;;  %v1741_v43 = vmov -inf  }
  0xb9   : > { %1235 = vmatpush3.bf16.msra.mxu0 %v1234_v5  ;;  %v638_v11 = vsel %vm518_vm2, %v1377_v9, 0  ;;  %v1379_v13 = vld [vmem:[%s2030_s14 + $0x8] sm:$0xff]   ;;  %v1380_v15 = vld [vmem:[%s2030_s14 + $0x50] sm:$0xff]   ;;  %v1383_v19 = vld [vmem:[%s2030_s14 + $0x18] sm:$0xff]   ;;  %1374 = vset.pattern.permute.xlu0 %v1740_v34  ;;  %515 = vst.msk [vmem:[%s2082_s23] sm:$0xff] %vm514_vm1, %v1741_v43  ;;  %v727_v45 = vand.u32 127, %v726_v44 }
  0xba   : > { %1236 = vmatprep.subr.bf16.mxu0 %v1737_v0  ;;  %1183 = vmatpush3.bf16.xpose.msra.mxu1 %v638_v11  ;;  %v641_v14 = vsel %vm518_vm2, %v1379_v13, 0  ;;  %v1381_v16 = vld [vmem:[%s2030_s14 + $0x10] sm:$0xff]   ;;  %v1384_v20 = vld [vmem:[%s2030_s14 + $0x60] sm:$0xff]   ;;  %v1386_v22 = vld [vmem:[%s2030_s14 + $0x68] sm:$0xff]   ;;  %v647_v23 = vsel %vm518_vm2, %v1383_v19, 0  ;;  %s730_s24 = ssub.s32 64, %s1165_s13 }
  0xbb   : > { %1240 = vmatprep.subr.msk.bf16.mxu1 %vm518_vm2, %v1378_v10  ;;  %v644_v18 = vsel %vm518_vm2, %v1381_v16, 0  ;;  %v1385_v21 = vld [vmem:[%s2030_s14 + $0x20] sm:$0xff]   ;;  %v1387_v24 = vld [vmem:[%s2030_s14 + $0x28] sm:$0xff]   ;;  %v1388_v25 = vld [vmem:[%s2030_s14 + $0x70] sm:$0xff]   ;;  %v728_v46 = vadd.s32 128, %v727_v45  ;;  %v731_v47 = vstv %s730_s24  ;;  %s2087_s16 = scalar_lea.vmem [#allocation15], %s2037_s12 }
  0xbc   : > { %v1389_v26 = vld [vmem:[%s2030_s14 + $0x30] sm:$0xff]   ;;  %v650_v27 = vsel %vm518_vm2, %v1385_v21, 0  ;;  %v653_v28 = vsel %vm518_vm2, %v1387_v24, 0  ;;  %v1390_v30 = vld [vmem:[%s2030_s14 + $0x78] sm:$0xff]   ;;  %vm732_vm5 = vcmp.ge.s32.totalorder %v727_v45, %v731_v47  ;;  %517 = vst.msk [vmem:[%s2087_s16] sm:$0xff] %vm514_vm1, %v1739_v1  ;;  %s2099_s17 = scalar_lea.vmem [#allocation16], %s2037_s12 }
  0xbd   : > { %1238 = vmatpush3.bf16.msra.mxu0 %v1237_v8  ;;  %v656_v29 = vsel %vm518_vm2, %v1389_v26, 0  ;;  %v1391_v31 = vld [vmem:[%s2030_s14 + $0x38] sm:$0xff]   ;;  %vm733_vm7 = vcmp.ge.s32.totalorder %v728_v46, %v731_v47  ;;  %519 = vst.msk [vmem:[%s2099_s17] sm:$0xff] %vm518_vm2, %v1739_v1  ;;  %s2105_s18 = sshll.u32 %s1718_s30, 7  ;;  %s876_s27 = sshll.u32 %s2082_s23, 4  ;;  %s877_s27 = int_to_ptr.vmem [resolvable:$true] %s876_s27 }
  0xbe   : > { %1200 = vmatprep.subr.bf16.mxu0 %v1376_v7  ;;  %v659_v32 = vsel %vm518_vm2, %v1391_v31, 0  ;;  %v737_v33 = vld [vmem:[#allocation6] sm:$0xff]  ;;  %v1146_v37 = vld [vmem:[#allocation9] ss:$0 sm:$0xff]  ;;  %s2111_s22 = scalar_lea.hbm %s2265_s5, %s2105_s18  ;;  %s848_s14 = scalar_lea.sflag [#allocation5], %s2025_s19 }
  0xbf   : > { %v739_v36 = vsub.s32 %v737_v33, %v738_v35  ;;  %s1540_s13 = scalar_lea.vmem %s877_s27, 128  ;;  %s1742_s12 = smov [#allocation12]  }
  0xc0   : > { %1231 = vmatmul.mubr.msk.f32.vlgmr.msra.gmra.mrb[0].mxu0 %vm437_vm3, %v425_v12  ;;  %v753_v59 = vld [vmem:[%s2082_s23] sm:$0xff]  ;;  %p1541_p0 = scmp.ne.s32.totalorder %s877_s27, %s1540_s13  ;;  %s1544_s24 = sshll.u32 %s1742_s12, 4  ;;  %s1545_s24 = int_to_ptr.vmem [resolvable:$false] %s1544_s24 }
  0xc1   : > { %1201 = vmatpush3.bf16.msra.mxu0 %v1377_v9  ;;  %741 = vperm.xlu1 %1375, %v739_v36   ;;  %s1546_s15 = scalar_lea.vmem %s1545_s24, 256  ;;  %p1547_p13 = scmp.lt.s32.totalorder %s877_s27, %s1545_s24 }
  0xc2   : > { %1202 = vmatprep.subr.bf16.mxu0 %v1378_v10  ;;  %1185 = vmatpush3.bf16.xpose.msra.mxu1 %v641_v14  ;;  %p1542_p5 = pnand %p1541_p0, %p1958_p6  ;;  %p1548_p9 = scmp.lt.s32.totalorder %s1546_s15, %s1540_s13 }
  0xc3   : > { %1241 = vmatprep.subr.msk.bf16.mxu1 %vm518_vm2, %v1380_v15  ;;  %v736_v60 = vld [vmem:[%s2087_s16] sm:$0xff] }
  0xc4   : > { %p1543_p10 = pneg %p1542_p5  ;;  %p1549_p3 = por %p1548_p9, %p1547_p13 }
  0xc5   : > { %1203 = vmatpush3.bf16.msra.mxu0 %v1379_v13 }
  0xc6   : > { %1204 = vmatprep.subr.bf16.mxu0 %v1380_v15  ;;  %p1550_p7 = pnand %p1549_p3, %p1543_p10 }
  0xc9   : > { %1205 = vmatpush3.bf16.msra.mxu0 %v1381_v16 }
  0xca   : > { %1206 = vmatprep.subr.bf16.mxu0 %v1382_v17  ;;  %1187 = vmatpush3.bf16.xpose.msra.mxu1 %v644_v18 }
  0xcb   : > { %1242 = vmatprep.subr.msk.bf16.mxu1 %vm518_vm2, %v1382_v17 }
  0xcd   : > { %1207 = vmatpush3.bf16.msra.mxu0 %v1383_v19 }
  0xce   : > { %1208 = vmatprep.subr.bf16.mxu0 %v1384_v20 }
  0xd1   : > { %1209 = vmatpush3.bf16.msra.mxu0 %v1385_v21 }
  0xd2   : > { %1210 = vmatprep.subr.bf16.mxu0 %v1386_v22  ;;  %1189 = vmatpush3.bf16.xpose.msra.mxu1 %v647_v23 }
  0xd3   : > { %1243 = vmatprep.subr.msk.bf16.mxu1 %vm518_vm2, %v1384_v20 }
  0xd5   : > { %1211 = vmatpush3.bf16.msra.mxu0 %v1387_v24 }
  0xd6   : > { %1212 = vmatprep.subr.bf16.mxu0 %v1388_v25 }
  0xd9   : > { %1213 = vmatpush3.bf16.msra.mxu0 %v1389_v26 }
  0xda   : > { %1191 = vmatpush3.bf16.xpose.msra.mxu1 %v650_v27  ;;  %1214 = vmatprep.subr.bf16.mxu0 %v1390_v30 }
  0xdb   : > { %1244 = vmatprep.subr.msk.bf16.mxu1 %vm518_vm2, %v1386_v22 }
  0xdd   : > { %1215 = vmatpush3.bf16.msra.mxu0 %v1391_v31 }
  0xe2   : > { %1193 = vmatpush3.bf16.xpose.msra.mxu1 %v653_v28 }
  0xe3   : > { %1245 = vmatprep.subr.msk.bf16.mxu1 %vm518_vm2, %v1388_v25 }
  0xea   : > { %1195 = vmatpush3.bf16.xpose.msra.mxu1 %v656_v29 }
  0xeb   : > { %1246 = vmatprep.subr.msk.bf16.mxu1 %vm518_vm2, %v1390_v30 }
  0xf2   : > { %1197 = vmatpush3.bf16.xpose.msra.mxu1 %v659_v32 }
 0x140   : > { %v742_v48 = vpop.permute.xlu1 %741 }
 0x141   : > { %vm743_vm6 = vcmp.eq.s32.totalorder %v727_v45, %v742_v48  ;;  %vm744_vm8 = vcmp.eq.s32.totalorder %v728_v46, %v742_v48 }
 0x193   : > { %v507_v38 = vpop.f32.mrb[0].mxu0 }
 0x194   : > { %v508_v39 = vadd.f32 %v1146_v37, %v507_v38  ;;  %v1232_v40 = vpop.f32.mrb[1].mxu0 }
 0x196   : > { %v511_v41 = vpack.c.bf16 %v508_v39, %v508_v39 }
 0x198   : > { %513 = vst.msk [vmem:[#allocation2] sm:$0xf] %vm512_vm4, %v511_v41 }
 0x19f   : > { %v552_v42 = vld [vmem:[#allocation2] sm:$0xf] }
 0x1a0   : > { %1198 = vmatprep.mubr.msk.bf16.mxu1 %vm518_vm2, %v552_v42 }
 0x1a1   : > { %1199 = vmatmul.mubr.msk.bf16.vlgmr.msra.gmra.mrb[0].mxu1 %vm518_vm2, %v552_v42 }
 0x274   : > { %v719_v49 = vpop.f32.mrb[0].mxu1 }
 0x275   : > { %v734_v50 = vsel %vm732_vm5, -3.4028235e+38, %v719_v49  ;;  %v721_v51 = vpop.f32.mrb[1].mxu1 }
 0x276   : > { %v735_v52 = vsel %vm733_vm7, -3.4028235e+38, %v721_v51  ;;  %v723_v53 = vpop.f32.mrb[2].mxu1  ;;  %v745_v54 = vsel %vm743_vm6, %v734_v50, 0.0 }
 0x277   : > { %v724_v55 = vpop.f32.mrb[3].mxu1  ;;  %v754_v56 = vmax.f32 %v734_v50, %v735_v52  ;;  %v746_v57 = vsel %vm744_vm8, %v735_v52, 0.0 }
 0x278   : > { %v747_v58 = vadd.f32 %v746_v57, %v745_v54 }
 0x279   : > { %755 = vmax.xlane.f32.xlu0 %v754_v56 }
 0x27a   : > { %748 = vadd.xlane.f32.xlu1 %v747_v58 }
 0x306   : > { %v756_v61 = vpop.xlane.xlu0 %755 }
 0x307   : > { %v757_v62 = vmax.f32 %v753_v59, %v756_v61  ;;  %v749_v63 = vpop.xlane.xlu1 %748 }
 0x308   : > { %v750_v0 = vadd.f32 %v749_v63, %v736_v60 }
 0x309   : > { %v758_v2 = vsub.f32 %v753_v59, %v757_v62  ;;  %846 = vst.msk [vmem:[%s2082_s23] sm:$0xff] %vm514_vm1, %v757_v62  ;;  %763 = vperm.xlu0 %1374, %v757_v62  }
 0x30a   : > { %752 = vst.msk [vmem:[%s2087_s16] sm:$0xff] %vm514_vm1, %v750_v0 }
 0x30b   : > { %v759_v13 = vmul.f32 1.442695, %v758_v2 }
 0x388   : > { %v764_v3 = vpop.permute.xlu0 %763 }
 0x389   : > { %v766_v4 = vsub.f32 %v734_v50, %v764_v3  ;;  %v767_v5 = vsub.f32 %v735_v52, %v764_v3 }
 0x38b   : > { %v768_v6 = vmul.f32 1.442695, %v766_v4  ;;  %v770_v7 = vmul.f32 1.442695, %v767_v5 }
 0x38d   : > { %1392 = vpow2.f32 %v768_v6 }
 0x38e   : > { %1394 = vpow2.f32 %v770_v7 }
 0x38f   : > { %1396 = vpow2.f32 %v759_v13 }
 0x397   : > { %v1393_v8 = vpop.eup %1392 }
 0x398   : > { %v1395_v9 = vpop.eup %1394  ;;  %v786_v10 = vpack.c.bf16 %v1393_v8, %v1393_v8 }
 0x399   : > { %v787_v11 = vpack.c.bf16 %v1395_v9, %v1395_v9  ;;  %v774_v12 = vadd.f32 %v1395_v9, %v1393_v8  ;;  %v1397_v14 = vpop.eup %1396 }
 0x39b   : > { %836 = vmatprep.mubr.bf16.mxu0 %v787_v11  ;;  %775 = vadd.xlane.f32.xlu1 %v774_v12 }
 0x39c   : > { %837 = vmatmul.mubr.bf16.vlgmr.msra.gmra.mrb[4].mxu0 %v786_v10 }
 0x3ac   : > { %782 = vperm.xlu1 %1375, %v1397_v14  }
 0x3ad   : > { %1553 = shalt.err (!%p1550_p7)
}
 0x3ae   : > { %s1554_s30 = scalar_lea.hbm %s2111_s22, 128  ;;  %s1558_s26 = scalar_lea.hbm %s2265_s5, 256 }
 0x3af   : > { %p1555_p12 = scmp.ne.s32.totalorder %s2111_s22, %s1554_s30  ;;  %p1559_p4 = scmp.lt.u32.totalorder %s2111_s22, %s2265_s5 }
 0x3b0   : > { %p1560_p11 = scmp.lt.u32.totalorder %s1558_s26, %s1554_s30  ;;  %p1562_p0 = scmp.lt.u32.totalorder %s1554_s30, %s2111_s22 }
 0x3b1   : > { %p1556_p2 = pnand %p1555_p12, %p1958_p6 }
 0x3b2   : > { %p1561_p8 = por %p1560_p11, %p1559_p4 }
 0x3b3   : > { %p1557_p1 = pneg %p1556_p2 }
 0x3b4   : > { %p1563_p5 = por %p1562_p0, %p1561_p8 }
 0x3b6   : > { %p1564_p10 = pnand %p1563_p5, %p1557_p1 }
 0x3b8   : > { %1567 = shalt.err (!%p1564_p10)
}
 0x3b9   : > { %1265 = dma.vmem_to_hbm [thread:$0]  (%p1958_p6), %s877_s27, 128, %s2111_s22, %s848_s14   ;;  %v772_v1 = vld [vmem:[%s2041_s21] sm:$0xff] }
 0x3ba   : > { %s889_s15 = sshll.u32 %s2041_s21, 4  ;;  %v773_v15 = vmul.f32 %v1397_v14, %v772_v1  ;;  %s902_s13 = sshll.u32 %s2087_s16, 4  ;;  %s2141_s15 = int_to_ptr.vmem [resolvable:$true] %s889_s15  ;;  %s2149_s13 = int_to_ptr.vmem [resolvable:$true] %s902_s13 }
 0x3bb   : > { %s2139_s1 = scalar_lea.hbm %s2266_s6, %s2105_s18  ;;  %s2147_s22 = scalar_lea.hbm %s2267_s7, %s2105_s18 }
 0x3bc   : > { %s2298_s16 = sand.u32 1, %s1822_s11   ;;  %s1568_s14 = scalar_lea.vmem %s2141_s15, 128 }
 0x3bd   : > { %s2155_s27 = scalar_lea.sflag [#allocation14], %s2298_s16  ;;  %p1569_p13 = scmp.ne.s32.totalorder %s2141_s15, %s1568_s14 }
 0x3be   : > { %s1743_s24 = smov [#allocation13]  }
 0x3bf   : > { %p1570_p9 = pnand %p1569_p13, %p1958_p6  ;;  %s1572_s30 = sshll.u32 %s1743_s24, 4  ;;  %s1573_s30 = int_to_ptr.vmem [resolvable:$false] %s1572_s30 }
 0x3c0   : > { %s1574_s23 = scalar_lea.vmem %s1573_s30, 256  ;;  %p1575_p7 = scmp.lt.s32.totalorder %s2141_s15, %s1573_s30 }
 0x3c1   : > { %p1571_p3 = pneg %p1570_p9  ;;  %p1576_p12 = scmp.lt.s32.totalorder %s1574_s23, %s1568_s14 }
 0x3c3   : > { %p1577_p2 = por %p1576_p12, %p1575_p7 }
 0x3c5   : > { %p1578_p1 = pnand %p1577_p2, %p1571_p3 }
 0x428   : > { %v776_v16 = vpop.xlane.xlu1 %775 }
 0x429   : > { %v777_v17 = vadd.f32 %v776_v16, %v773_v15 }
 0x42b   : > { %778 = vst.msk [vmem:[%s2041_s21] sm:$0xff] %vm514_vm1, %v777_v17 }
 0x42c   : > { %1581 = shalt.err (!%p1578_p1)
}
 0x42d   : > { %s1582_s11 = scalar_lea.hbm %s2139_s1, 128  ;;  %s1586_s12 = scalar_lea.hbm %s2266_s6, 256 }
 0x42e   : > { %p1583_p4 = scmp.ne.s32.totalorder %s2139_s1, %s1582_s11  ;;  %p1587_p0 = scmp.lt.u32.totalorder %s2139_s1, %s2266_s6 }
 0x42f   : > { %p1588_p5 = scmp.lt.u32.totalorder %s1586_s12, %s1582_s11  ;;  %p1590_p13 = scmp.lt.u32.totalorder %s1582_s11, %s2139_s1 }
 0x430   : > { %p1584_p11 = pnand %p1583_p4, %p1958_p6 }
 0x431   : > { %p1589_p10 = por %p1588_p5, %p1587_p0 }
 0x432   : > { %p1585_p8 = pneg %p1584_p11 }
 0x433   : > { %p1591_p9 = por %p1590_p13, %p1589_p10 }
 0x435   : > { %p1592_p3 = pnand %p1591_p9, %p1585_p8 }
 0x437   : > { %1595 = shalt.err (!%p1592_p3)
}
 0x438   : > { %1266 = dma.vmem_to_hbm [thread:$0]  (%p1958_p6), %s2141_s15, 128, %s2139_s1, %s2155_s27  }
 0x439   : > { %s1596_s14 = scalar_lea.vmem %s2149_s13, 128  ;;  %s1744_s30 = smov [#allocation15]  }
 0x43a   : > { %p1597_p7 = scmp.ne.s32.totalorder %s2149_s13, %s1596_s14  ;;  %s1600_s23 = sshll.u32 %s1744_s30, 4  ;;  %s1601_s23 = int_to_ptr.vmem [resolvable:$false] %s1600_s23 }
 0x43b   : > { %s1602_s11 = scalar_lea.vmem %s1601_s23, 256  ;;  %p1603_p1 = scmp.lt.s32.totalorder %s2149_s13, %s1601_s23 }
 0x43c   : > { %p1598_p12 = pnand %p1597_p7, %p1958_p6  ;;  %p1604_p4 = scmp.lt.s32.totalorder %s1602_s11, %s1596_s14 }
 0x43e   : > { %p1599_p2 = pneg %p1598_p12  ;;  %p1605_p11 = por %p1604_p4, %p1603_p1 }
 0x440   : > { %p1606_p8 = pnand %p1605_p11, %p1599_p2 }
 0x442   : > { %1609 = shalt.err (!%p1606_p8)
}
 0x443   : > { %s1610_s15 = scalar_lea.hbm %s2147_s22, 128  ;;  %s1614_s26 = scalar_lea.hbm %s2267_s7, 256 }
 0x444   : > { %p1611_p0 = scmp.ne.s32.totalorder %s2147_s22, %s1610_s15  ;;  %p1615_p13 = scmp.lt.u32.totalorder %s2147_s22, %s2267_s7 }
 0x445   : > { %p1616_p9 = scmp.lt.u32.totalorder %s1614_s26, %s1610_s15  ;;  %p1618_p7 = scmp.lt.u32.totalorder %s1610_s15, %s2147_s22 }
 0x446   : > { %p1612_p5 = pnand %p1611_p0, %p1958_p6 }
 0x447   : > { %p1617_p3 = por %p1616_p9, %p1615_p13 }
 0x448   : > { %p1613_p10 = pneg %p1612_p5 }
 0x449   : > { %p1619_p12 = por %p1618_p7, %p1617_p3 }
 0x44b   : > { %p1620_p2 = pnand %p1619_p12, %p1613_p10 }
 0x44d   : > { %1623 = shalt.err (!%p1620_p2)
}
 0x44e   : > { %1267 = dma.vmem_to_hbm [thread:$0]  (%p1958_p6), %s2149_s13, 128, %s2147_s22, %s2155_s27   ;;  %v779_v18 = vld [vmem:[%s2099_s17] sm:$0xff]  ;;  %v783_v19 = vpop.permute.xlu1 %782 }
 0x44f   : > { %s915_s24 = sshll.u32 %s2099_s17, 4  ;;  %v785_v22 = vmul.f32 %v783_v19, %v779_v18  ;;  %s2207_s23 = scalar_lea.hbm %s2268_s8, %s2105_s18  ;;  %s2209_s24 = int_to_ptr.vmem [resolvable:$true] %s915_s24 }
 0x450   : > { %s863_s13 = scalar_lea.sflag [#allocation17], %s2025_s19  ;;  %s1624_s22 = scalar_lea.vmem %s2209_s24, 128 }
 0x451   : > { %p1625_p1 = scmp.ne.s32.totalorder %s2209_s24, %s1624_s22  ;;  %s1745_s27 = smov [#allocation16]  }
 0x452   : > { %s1628_s11 = sshll.u32 %s1745_s27, 4  ;;  %s1629_s11 = int_to_ptr.vmem [resolvable:$false] %s1628_s11 }
 0x453   : > { %p1626_p4 = pnand %p1625_p1, %p1958_p6  ;;  %s1630_s15 = scalar_lea.vmem %s1629_s11, 256 }
 0x454   : > { %p1631_p8 = scmp.lt.s32.totalorder %s2209_s24, %s1629_s11  ;;  %p1632_p0 = scmp.lt.s32.totalorder %s1630_s15, %s1624_s22 }
 0x455   : > { %p1627_p11 = pneg %p1626_p4 }
 0x456   : > { %p1633_p5 = por %p1632_p0, %p1631_p8 }
 0x458   : > { %p1634_p10 = pnand %p1633_p5, %p1627_p11 }
 0x46f   : > { %v1216_v20 = vpop.f32.mrb[4].mxu0 }
 0x470   : > { %v1217_v21 = vpop.f32.mrb[5].mxu0 }
 0x471   : > { %v1218_v23 = vadd.f32 %v1217_v21, %v1216_v20  ;;  %v1219_v24 = vpop.f32.mrb[6].mxu0 }
 0x472   : > { %v1220_v25 = vpop.f32.mrb[7].mxu0 }
 0x473   : > { %v844_v26 = vadd.f32 %v1218_v23, %v785_v22 }
 0x475   : > { %845 = vst.msk [vmem:[%s2099_s17] sm:$0xff] %vm518_vm2, %v844_v26 }
 0x476   : > { %1637 = shalt.err (!%p1634_p10)
}
 0x477   : > { %s1638_s19 = scalar_lea.hbm %s2207_s23, 128  ;;  %s1642_s1 = scalar_lea.hbm %s2268_s8, 256 }
 0x478   : > { %p1639_p13 = scmp.ne.s32.totalorder %s2207_s23, %s1638_s19  ;;  %p1643_p7 = scmp.lt.u32.totalorder %s2207_s23, %s2268_s8 }
 0x479   : > { %p1644_p12 = scmp.lt.u32.totalorder %s1642_s1, %s1638_s19  ;;  %p1646_p1 = scmp.lt.u32.totalorder %s1638_s19, %s2207_s23 }
 0x47a   : > { %p1640_p9 = pnand %p1639_p13, %p1958_p6 }
 0x47b   : > { %p1645_p2 = por %p1644_p12, %p1643_p7 }
 0x47c   : > { %p1641_p3 = pneg %p1640_p9 }
 0x47d   : > { %p1647_p4 = por %p1646_p1, %p1645_p2 }
 0x47f   : > { %p1648_p11 = pnand %p1647_p4, %p1641_p3 }
 0x481   : > { %1651 = shalt.err (!%p1648_p11)
}
 0x482   : > { %1268 = dma.vmem_to_hbm [thread:$0]  (%p1958_p6), %s2209_s24, 128, %s2207_s23, %s863_s13  }
 0x483 PF: > { %s2299_s12 = sld [smem:[#allocation25_spill]]  ;;  %s2300_s16 = sld [smem:[#allocation26_spill]] }
 0x484   : > { %p2302_p0 = scmp.ge.s32.totalorder %s1726_s10, 2 }
 0x489   : > { %s927_s14 = sand.u32 1, %s2299_s12   ;;  %p2301_p8 = scmp.ne.s32.totalorder %s2300_s16, 0 }
 0x48a   : > { %s928_s30 = scalar_lea.sflag [#allocation5], %s927_s14 }
 0x48b   : > { %p1291_p5 = pnand %p2302_p0, %p2301_p8 }
 0x48d   : > { %1693 = dma.done.wait (!%p1291_p5), %s928_s30, 128  }
 0x48e   : > { %1695 = vsyncadd (!%p1291_p5), %s928_s30, 4294967168  ;;  %s2303_s22 = sadd.s32 4294967294, %s1726_s10  }
 0x48f   : > { %s936_s27 = sand.u32 1, %s2303_s22  }
 0x490   : > { %s937_s11 = scalar_lea.sflag [#allocation14], %s936_s27 }
 0x491   : > { %1697 = dma.done.wait (!%p1291_p5), %s937_s11, 256  }
 0x492   : > { %1699 = vsyncadd (!%p1291_p5), %s937_s11, 4294967040  ;;  %s955_s20 = scalar_lea.sflag [#allocation17], %s927_s14 }
 0x493   : > { %1701 = dma.done.wait (!%p1291_p5), %s955_s20, 128  }
 0x494   : > { %1703 = vsyncadd (!%p1291_p5), %s955_s20, 4294967168  ;;  %s31_s10 = sadd.s32 1, %s1726_s10   ;;  %s2304_s27 = smov %s1710_s28 }
 0x495   : > { %p28_p6 = scmp.ge.s32.totalorder %s31_s10, 4   ;;  %s2305_s28 = smov %s1714_s29 }
 0x496   : > { %s2306_s29 = smov %s1968_s25  ;;  %s2307_s30 = smov %s1722_s9 }
 0x497   : > { %s2308_s9 = smov %s2310_s0  ;;  %30 = sbr.rel (!%p28_p6) target bundleno = 14 (0xe), region = 153 }
 0x49e   :  { %960 = vsyncpa [#allocation4], 1 }
 0x49f   :  { %962 = vsyncpa [#allocation4 + $0x1], 1 }
 0x4a0   :  { %963 = vsyncpa [#allocation7], 1 }
 0x4a1   :  { %964 = vsyncpa [#allocation10], 1 }
 0x4a2   :  { %965 = vsyncpa [#allocation5], 1 }
 0x4a3   :  { %967 = vsyncpa [#allocation5 + $0x1], 1 }
 0x4a4   :  { %968 = vsyncpa [#allocation14], 1 }
 0x4a5   :  { %970 = vsyncpa [#allocation14 + $0x1], 1 }
 0x4a6   :  { %971 = vsyncpa [#allocation17], 1 }
 0x4a7   :  { %973 = vsyncpa [#allocation17 + $0x1], 1 }

</bundles_post_ra>
